<compile_context>
chip_gen: v7x
topology: tpu7x:2x2x1
jax: 0.10.0
libtpu: 0.0.40
codegen_flags: <defaults>
</compile_context>

<pallas_src>
import math
from functools import partial

import jax
import jax.numpy as jnp
from jax import lax
from jax.experimental import pallas as pl
from jax.experimental.pallas import tpu as pltpu


# --------------------------- tiling / VMEM helpers ---------------------------

def _pick_tile(n, max_tile, align):
    """Largest tile <= max_tile that divides n and is a multiple of `align`;
    small dims (n <= max_tile) use the full dimension (always legal)."""
    if n <= max_tile:
        return n
    t = (max_tile // align) * align
    while t >= align:
        if n % t == 0:
            return t
        t -= align
    return n  # no aligned divisor: one full block (correct, just unpipelined)


def _vmem_limit_bytes(need_bytes):
    """Explicit scoped-VMEM limit: 2x headroom, >= 8 MiB, capped below 128 MiB."""
    return int(min(max(2 * need_bytes, 8 * 1024 * 1024), 127 * 1024 * 1024))


# ----------------------------- Pallas kernels --------------------------------

def _linear_kernel(x_ref, w_ref, b_ref, o_ref, acc_ref, *, matmul_dtype):
    # grid: (M/tm, Dout/tn, Din/tk); Din is the reduction ("arbitrary") axis.
    # x: (tm, tk), w: (tk, tn), b: (1, tn), o: (tm, tn), acc: (tm, tn) f32
    @pl.when(pl.program_id(2) == 0)
    def _():
        acc_ref[...] = jnp.zeros_like(acc_ref)

    acc_ref[...] += jnp.dot(x_ref[...].astype(matmul_dtype),
                            w_ref[...].astype(matmul_dtype),
                            preferred_element_type=jnp.float32)

    @pl.when(pl.program_id(2) == pl.num_programs(2) - 1)
    def _():
        o_ref[...] = (acc_ref[...] + b_ref[...]).astype(o_ref.dtype)


def _attn_kernel(q_ref, k_ref, v_ref, ctx_ref, attn_ref, *,
                 scale, num_heads, d_head, matmul_dtype):
    # q_ref:   (1, tq, d_model)   current q tile of one batch element
    # k_ref:   (1, Lk, d_model)   full keys of that batch element
    # v_ref:   (1, Lk, d_model)
    # ctx_ref: (1, tq, d_model)   context in final (B, Lq, H*dh) layout
    # attn_ref:(H, 1, tq, Lk)     head-major attention probabilities
    exact = jnp.dtype(matmul_dtype) == jnp.dtype(jnp.float32)

    # Scale folded into q (tq*D muls instead of tq*Lk per head); cast once.
    q = (q_ref[0] * scale).astype(matmul_dtype)     # (tq, D)
    k = k_ref[0].astype(matmul_dtype)               # (Lk, D)
    v = v_ref[0].astype(matmul_dtype)               # (Lk, D)

    parts = []
    # TODO(synk): for num_heads >= 8 a lax.fori_loop over heads (dynamic lane
    # slices) would bound live ranges better than this static unroll; and for
    # very long Lk a flash-style Lk grid axis with online-softmax accumulators
    # would be needed (the module must return the full attn matrix anyway).
    for h in range(num_heads):
        lo = h * d_head
        hi = lo + d_head
        # QK^T as a last-dim contraction: feeds the MXU without a k.T relayout.
        s = lax.dot_general(q[:, lo:hi], k[:, lo:hi], (((1,), (1,)), ((), ())),
                            preferred_element_type=jnp.float32)    # (tq, Lk)
        # Numerically-stable softmax in f32.
        s = s - jnp.max(s, axis=-1, keepdims=True)
        p = jnp.exp(s)
        p = p * pl.reciprocal(jnp.sum(p, axis=-1, keepdims=True),
                              approx=not exact)
        attn_ref[h, 0] = p                                         # full-Lk store
        parts.append(jnp.dot(p.astype(matmul_dtype), v[:, lo:hi],
                             preferred_element_type=jnp.float32))  # (tq, dh)

    # Lane-dense context write: single full-width store instead of per-head
    # sub-128-lane masked stores.
    ctx_ref[0] = jnp.concatenate(parts, axis=-1).astype(ctx_ref.dtype)


# -------------------------------- wrappers -----------------------------------

def pallas_linear(x, w, b, *, matmul_dtype=jnp.bfloat16):
    """x: (M, Din), w: (Din, Dout), b: (Dout,) -> (M, Dout) f32."""
    M, Din = x.shape
    Dout = w.shape[1]
    tm = _pick_tile(M, 512, 8)
    tn = _pick_tile(Dout, 512, 128)
    tk = _pick_tile(Din, 512, 128)
    b2 = b.reshape(1, Dout).astype(jnp.float32)

    # blocks live in VMEM in their storage dtype (f32), double-buffered.
    need = 2 * 4 * (tm * tk + tk * tn + tn + tm * tn) + 4 * tm * tn

    return pl.pallas_call(
        partial(_linear_kernel, matmul_dtype=matmul_dtype),
        out_shape=jax.ShapeDtypeStruct((M, Dout), jnp.float32),
        grid=(M // tm, Dout // tn, Din // tk),
        in_specs=[
            pl.BlockSpec((tm, tk), lambda i, j, kk: (i, kk)),
            pl.BlockSpec((tk, tn), lambda i, j, kk: (kk, j)),
            pl.BlockSpec((1, tn), lambda i, j, kk: (0, j)),
        ],
        out_specs=pl.BlockSpec((tm, tn), lambda i, j, kk: (i, j)),
        scratch_shapes=[pltpu.VMEM((tm, tn), jnp.float32)],
        compiler_params=pltpu.CompilerParams(
            dimension_semantics=("parallel", "parallel", "arbitrary"),
            vmem_limit_bytes=_vmem_limit_bytes(need)),
    )(x, w, b2)


def pallas_sdpa(q, k, v, *, num_heads, d_model, scale,
                q_blk=0, k_blk=0, v_blk=0, matmul_dtype=jnp.bfloat16):
    """q: (B, Lq, *), k/v: (B, Lk, *); the *_blk arguments select which
    d_model-wide lane block of each (possibly packed) array holds that operand.
    Returns context (B, Lq, d_model) f32 and attn (H, B, Lq, Lk) f32."""
    B, Lq = q.shape[0], q.shape[1]
    Lk = k.shape[1]
    d_head = d_model // num_heads

    tq = _pick_tile(Lq, 256, 8)

    def step_bytes(t):
        # double-buffered q/k/v/ctx/attn blocks (all f32 in VMEM)
        return 2 * 4 * (t * d_model + 2 * Lk * d_model + t * d_model
                        + num_heads * t * Lk)

    # Keep the per-step working set well under v7x's 64 MiB VMEM.
    while step_bytes(tq) > 48 * 1024 * 1024 and tq % 16 == 0 and tq > 128:
        tq //= 2
    # v7x has 2 TensorCores: make sure the parallel grid has >= 2 steps if we can.
    while B * (Lq // tq) < 2 and tq % 16 == 0:
        tq //= 2

    kern = partial(_attn_kernel, scale=scale, num_heads=num_heads,
                   d_head=d_head, matmul_dtype=matmul_dtype)
    ctx, attn = pl.pallas_call(
        kern,
        out_shape=(
            jax.ShapeDtypeStruct((B, Lq, d_model), jnp.float32),
            jax.ShapeDtypeStruct((num_heads, B, Lq, Lk), jnp.float32),
        ),
        grid=(B, Lq // tq),
        in_specs=[
            pl.BlockSpec((1, tq, d_model), lambda b, qi, _c=q_blk: (b, qi, _c)),
            pl.BlockSpec((1, Lk, d_model), lambda b, qi, _c=k_blk: (b, 0, _c)),
            pl.BlockSpec((1, Lk, d_model), lambda b, qi, _c=v_blk: (b, 0, _c)),
        ],
        out_specs=(
            pl.BlockSpec((1, tq, d_model), lambda b, qi: (b, qi, 0)),
            pl.BlockSpec((num_heads, 1, tq, Lk), lambda b, qi: (0, b, qi, 0)),
        ),
        compiler_params=pltpu.CompilerParams(
            dimension_semantics=("parallel", "parallel"),
            vmem_limit_bytes=_vmem_limit_bytes(step_bytes(tq))),
    )(q, k, v)
    return ctx, attn


def multi_head_attention(query, key, value, params, num_heads, *,
                         matmul_dtype=jnp.bfloat16, scale=None):
    """Replicates MultiHeadAttention.forward.

    query: (B, Lq, d_model), key/value: (B, Lk, d_model)
    returns: context (B, Lq, d_model), attn (B*num_heads, Lq, Lk) [head-major]
    """
    B, Lq, d_model = query.shape
    Lk = key.shape[1]
    if scale is None:
        # TODO(synk): source module references undefined `self.sqrt_dim`; the
        # source repo's convention is sqrt(d_model), so that is the default.
        scale = 1.0 / math.sqrt(d_model)

    wq, wk, wv = params["wq"], params["wk"], params["wv"]
    bq, bk, bv = params["bq"], params["bk"], params["bv"]

    def proj(x, w, b):
        Bx, Lx, _ = x.shape
        y = pallas_linear(x.reshape(Bx * Lx, d_model), w, b,
                          matmul_dtype=matmul_dtype)
        return y.reshape(Bx, Lx, -1)                 # free reshape, no transpose

    # Lane-block packing requires d_model-aligned (multiple of 128) blocks.
    fuse_ok = (d_model % 128 == 0)

    if fuse_ok and (query is key) and (key is value):
        # Self-attention: read x once against wq|wk|wv concatenated along Dout;
        # the attention kernel picks q/k/v straight out of the packed result.
        w_qkv = jnp.concatenate([wq, wk, wv], axis=1)
        b_qkv = jnp.concatenate([bq, bk, bv], axis=0)
        packed = proj(query, w_qkv, b_qkv)           # (B, L, 3*d_model)
        q = k = v = packed
        qb, kb, vb = 0, 1, 2
    elif fuse_ok and (key is value):
        # Typical seq2seq cross-attention: key == value == encoder outputs.
        w_kv = jnp.concatenate([wk, wv], axis=1)
        b_kv = jnp.concatenate([bk, bv], axis=0)
        q = proj(query, wq, bq)                      # (B, Lq, d_model)
        k = v = proj(key, w_kv, b_kv)                # (B, Lk, 2*d_model)
        qb, kb, vb = 0, 0, 1
    else:
        q = proj(query, wq, bq)
        k = proj(key, wk, bk)
        v = proj(value, wv, bv)
        qb, kb, vb = 0, 0, 0

    context, attn4 = pallas_sdpa(q, k, v, num_heads=num_heads, d_model=d_model,
                                 scale=scale, q_blk=qb, k_blk=kb, v_blk=vb,
                                 matmul_dtype=matmul_dtype)
    # (H, B, Lq, Lk) -> (H*B, Lq, Lk): free reshape, matches torch flatten.
    attn = attn4.reshape(num_heads * B, Lq, Lk)
    return context, attn


# --------------------------- reference (pure JAX) -----------------------------

def reference_mha(query, key, value, params, num_heads, scale=None):
    B, Lq, d_model = query.shape
    Lk = key.shape[1]
    d_head = d_model // num_heads
    if scale is None:
        scale = 1.0 / math.sqrt(d_model)
    hp = lax.Precision.HIGHEST

    def proj(x, w, b):
        return jnp.matmul(x, w, precision=hp) + b

    q = proj(query, params["wq"], params["bq"])
    k = proj(key, params["wk"], params["bk"])
    v = proj(value, params["wv"], params["bv"])

    def split(x, L):
        return (x.reshape(B, L, num_heads, d_head)
                 .transpose(2, 0, 1, 3)
                 .reshape(num_heads * B, L, d_head))

    qh, kh, vh = split(q, Lq), split(k, Lk), split(v, Lk)
    score = jnp.einsum("bqd,bkd->bqk", qh, kh, precision=hp) * scale
    attn = jax.nn.softmax(score, axis=-1)
    ctx = jnp.einsum("bqk,bkd->bqd", attn, vh, precision=hp)
    context = (ctx.reshape(num_heads, B, Lq, d_head)
                  .transpose(1, 2, 0, 3)
                  .reshape(B, Lq, d_model))
    return context, attn


# ------------------------------------ main ------------------------------------

if __name__ == "__main__":
    B, Lq, Lk = 2, 8, 16
    d_model, num_heads = 128, 4

    key0 = jax.random.PRNGKey(0)
    ks = jax.random.split(key0, 9)
    limit = math.sqrt(6.0 / (d_model + d_model))
    params = {
        "wq": jax.random.uniform(ks[0], (d_model, d_model), jnp.float32, -limit, limit),
        "wk": jax.random.uniform(ks[1], (d_model, d_model), jnp.float32, -limit, limit),
        "wv": jax.random.uniform(ks[2], (d_model, d_model), jnp.float32, -limit, limit),
        "bq": 0.1 * jax.random.normal(ks[6], (d_model,), jnp.float32),
        "bk": 0.1 * jax.random.normal(ks[7], (d_model,), jnp.float32),
        "bv": 0.1 * jax.random.normal(ks[8], (d_model,), jnp.float32),
    }
    query = jax.random.normal(ks[3], (B, Lq, d_model), jnp.float32)
    key_t = jax.random.normal(ks[4], (B, Lk, d_model), jnp.float32)
    value = jax.random.normal(ks[5], (B, Lk, d_model), jnp.float32)

    # 1) General path (distinct q/k/v), f32 MXU path -> tight parity.
    ctx, attn = multi_head_attention(query, key_t, value, params, num_heads,
                                     matmul_dtype=jnp.float32)
    ctx = jax.block_until_ready(ctx)
    attn = jax.block_until_ready(attn)
    ref_ctx, ref_attn = reference_mha(query, key_t, value, params, num_heads)
    assert ctx.shape == (B, Lq, d_model)
    assert attn.shape == (B * num_heads, Lq, Lk)
    assert jnp.allclose(ctx, ref_ctx, atol=1e-4, rtol=1e-4)
    assert jnp.allclose(attn, ref_attn, atol=1e-4, rtol=1e-4)

    # 2) Fused K/V projection path (key is value -- typical seq2seq usage).
    ctx2, attn2 = multi_head_attention(query, key_t, key_t, params, num_heads,
                                       matmul_dtype=jnp.float32)
    ctx2 = jax.block_until_ready(ctx2)
    ref_ctx2, ref_attn2 = reference_mha(query, key_t, key_t, params, num_heads)
    assert jnp.allclose(ctx2, ref_ctx2, atol=1e-4, rtol=1e-4)
    assert jnp.allclose(attn2, ref_attn2, atol=1e-4, rtol=1e-4)

    # 3) Fully fused QKV projection path (self-attention).
    ctx3, attn3 = multi_head_attention(query, query, query, params, num_heads,
                                       matmul_dtype=jnp.float32)
    ctx3 = jax.block_until_ready(ctx3)
    ref_ctx3, ref_attn3 = reference_mha(query, query, query, params, num_heads)
    assert jnp.allclose(ctx3, ref_ctx3, atol=1e-4, rtol=1e-4)
    assert jnp.allclose(attn3, ref_attn3, atol=1e-4, rtol=1e-4)

    # 4) Perf-default bf16 operands (f32 accumulation) -- loose parity only.
    ctx4, attn4 = multi_head_attention(query, key_t, value, params, num_heads)
    ctx4 = jax.block_until_ready(ctx4)
    attn4 = jax.block_until_ready(attn4)
    assert bool(jnp.all(jnp.isfinite(ctx4)))
    assert float(jnp.max(jnp.abs(ctx4 - ref_ctx))) < 0.25
    assert float(jnp.max(jnp.abs(attn4 - ref_attn))) < 0.25

    print("KERNEL_OK")
</pallas_src>

<mosaic_0001>
module attributes {stable_mosaic.version = 11 : i64} {
  func.func @_linear_kernel(%arg0: i32, %arg1: i32, %arg2: i32, %arg3: memref<16x128xf32, #tpu.memory_space<vmem>>, %arg4: memref<128x128xf32, #tpu.memory_space<vmem>>, %arg5: memref<1x128xf32, #tpu.memory_space<vmem>>, %arg6: memref<16x128xf32, #tpu.memory_space<vmem>>, %arg7: memref<16x128xf32, #tpu.memory_space<vmem>>) attributes {dimension_semantics = [#tpu.dimension_semantics<parallel>, #tpu.dimension_semantics<parallel>, #tpu.dimension_semantics<arbitrary>], iteration_bounds = array<i64: 1, 1, 1>, scalar_prefetch = 0 : i64, scratch_operands = 1 : i64, tpu.core_type = #tpu.core_type<tc>, window_params = [{transform_indices = @transform_0, window_bounds = array<i64: 16, 128>}, {transform_indices = @transform_1, window_bounds = array<i64: 128, 128>}, {transform_indices = @transform_2, window_bounds = array<i64: 1, 128>}, {transform_indices = @transform_3, window_bounds = array<i64: 16, 128>}]} {
    %c0_i32 = arith.constant 0 : i32
    %0 = arith.cmpi eq, %arg2, %c0_i32 : i32
    %1 = arith.extui %0 : i1 to i32
    %c0_i32_0 = arith.constant 0 : i32
    %2 = arith.cmpi ne, %1, %c0_i32_0 : i32
    scf.if %2 {
      %cst_10 = arith.constant 0.000000e+00 : f32
      %12 = vector.broadcast %cst_10 : f32 to vector<16x128xf32>
      %c0_11 = arith.constant 0 : index
      %c0_12 = arith.constant 0 : index
      %13 = vector.load %arg7[%c0_11, %c0_12] : memref<16x128xf32, #tpu.memory_space<vmem>>, vector<16x128xf32>
      tpu.vector_store %arg7[%c0_11, %c0_12], %12 {strides = array<i32>} : memref<16x128xf32, #tpu.memory_space<vmem>>, vector<16x128xf32>,
    } else {
    }
    %c0 = arith.constant 0 : index
    %c0_1 = arith.constant 0 : index
    %3 = vector.load %arg7[%c0, %c0_1] : memref<16x128xf32, #tpu.memory_space<vmem>>, vector<16x128xf32>
    %c0_2 = arith.constant 0 : index
    %c0_3 = arith.constant 0 : index
    %4 = vector.load %arg3[%c0_2, %c0_3] : memref<16x128xf32, #tpu.memory_space<vmem>>, vector<16x128xf32>
    %c0_4 = arith.constant 0 : index
    %c0_5 = arith.constant 0 : index
    %5 = vector.load %arg4[%c0_4, %c0_5] : memref<128x128xf32, #tpu.memory_space<vmem>>, vector<128x128xf32>
    %cst = arith.constant dense<0.000000e+00> : vector<16x128xf32>
    %6 = tpu.matmul %4, %5, %cst {dimension_numbers = #tpu.dot_dimension_numbers<[1], [0], [0], [1], [0, 0, 1, 1], [], []>} : vector<16x128xf32>, vector<128x128xf32>, vector<16x128xf32> -> vector<16x128xf32>
    %7 = arith.addf %3, %6 : vector<16x128xf32>
    %c0_6 = arith.constant 0 : index
    %c0_7 = arith.constant 0 : index
    %8 = vector.load %arg7[%c0_6, %c0_7] : memref<16x128xf32, #tpu.memory_space<vmem>>, vector<16x128xf32>
    tpu.vector_store %arg7[%c0_6, %c0_7], %7 {strides = array<i32>} : memref<16x128xf32, #tpu.memory_space<vmem>>, vector<16x128xf32>,
    %c0_i32_8 = arith.constant 0 : i32
    %9 = arith.cmpi eq, %arg2, %c0_i32_8 : i32
    %10 = arith.extui %9 : i1 to i32
    %c0_i32_9 = arith.constant 0 : i32
    %11 = arith.cmpi ne, %10, %c0_i32_9 : i32
    scf.if %11 {
      %c0_10 = arith.constant 0 : index
      %c0_11 = arith.constant 0 : index
      %12 = vector.load %arg7[%c0_10, %c0_11] : memref<16x128xf32, #tpu.memory_space<vmem>>, vector<16x128xf32>
      %c0_12 = arith.constant 0 : index
      %c0_13 = arith.constant 0 : index
      %13 = vector.load %arg5[%c0_12, %c0_13] : memref<1x128xf32, #tpu.memory_space<vmem>>, vector<1x128xf32>
      %14 = vector.broadcast %13 : vector<1x128xf32> to vector<16x128xf32>
      %15 = arith.addf %12, %14 : vector<16x128xf32>
      %c0_14 = arith.constant 0 : index
      %c0_15 = arith.constant 0 : index
      %16 = vector.load %arg6[%c0_14, %c0_15] : memref<16x128xf32, #tpu.memory_space<vmem>>, vector<16x128xf32>
      tpu.vector_store %arg6[%c0_14, %c0_15], %15 {strides = array<i32>} : memref<16x128xf32, #tpu.memory_space<vmem>>, vector<16x128xf32>,
    } else {
    }
    return
  }
  func.func @transform_0(%arg0: i32, %arg1: i32, %arg2: i32) -> (i32, i32) {
    %c0_i32 = arith.constant 0 : i32
    return %arg0, %arg2 : i32, i32
  }
  func.func @transform_1(%arg0: i32, %arg1: i32, %arg2: i32) -> (i32, i32) {
    %c0_i32 = arith.constant 0 : i32
    return %arg2, %arg1 : i32, i32
  }
  func.func @transform_2(%arg0: i32, %arg1: i32, %arg2: i32) -> (i32, i32) {
    %c0_i32 = arith.constant 0 : i32
    %c0_i32_0 = arith.constant 0 : i32
    return %c0_i32, %arg1 : i32, i32
  }
  func.func @transform_3(%arg0: i32, %arg1: i32, %arg2: i32) -> (i32, i32) {
    %c0_i32 = arith.constant 0 : i32
    return %arg0, %arg1 : i32, i32
  }
}

</mosaic_0001>

<bundles_post_ra>
// kernel: tpu_custom_call.1
= control target key start
LH: loop header
LB: loop body
LE: loop exit
PB: predicated region body
PF: predicated region fallthrough
CT: control target
= control target key end

     0   :  { %8 = vsyncpa [#allocation4], 0  ;;  %s418_s0 = inlined_call_operand.hbm [shape: f32[16,128], index: 0, kind: input, shape index: {}]   ;;  %s419_s1 = inlined_call_operand.hbm [shape: f32[128,128], index: 1, kind: input, shape index: {}]   ;;  %s420_s2 = inlined_call_operand.vmem [shape: f32[1,128], index: 2, kind: input, shape index: {}]   ;;  %s421_s3 = inlined_call_operand.hbm [shape: f32[16,128], index: 3, kind: output, shape index: {}]  }
   0x1   :  { %9 = vsyncpa [#allocation7], 0 }
   0x2   :  { %10 = vsyncpa [#allocation5], 0  ;;  %s345_s12 = smov [#allocation3]   ;;  %s273_s16 = scalar_lea.hbm %s418_s0, 256 }
   0x3   :  { %s16_s13 = sshll.u32 %s345_s12, 4  ;;  %p274_p0 = scmp.ne.s32.totalorder %s418_s0, %s273_s16  ;;  %s17_s13 = int_to_ptr.vmem [resolvable:$true] %s16_s13 }
   0x4   :  { %p277_p1 = scmp.lt.u32.totalorder %s273_s16, %s418_s0 }
   0x6   :  { %p279_p2 = pnand %p277_p1, %p274_p0 }
   0x8   :  { %282 = shalt.err (!%p279_p2)
}
   0x9   :  { %s283_s21 = scalar_lea.vmem %s17_s13, 256  ;;  %p288_p4 = scmp.lt.s32.totalorder %s17_s13, %s17_s13 }
   0xa   :  { %p284_p3 = scmp.ne.s32.totalorder %s17_s13, %s283_s21  ;;  %p289_p5 = scmp.lt.s32.totalorder %s283_s21, %s283_s21 }
   0xc   :  { %p290_p6 = por %p289_p5, %p288_p4 }
   0xe   :  { %p291_p7 = pnand %p290_p6, %p284_p3 }
  0x10   :  { %294 = shalt.err (!%p291_p7)
}
  0x11   :  { %s346_s22 = smov 128   ;;  %s347_s23 = smov 8  }
  0x12   :  { %22 = dma.hbm_to_vmem [thread:$0]  %s418_s0, 256, %s17_s13, [#allocation4], %s346_s22, %s346_s22, %s347_s23  }
  0x13   :  { %s348_s26 = smov [#allocation6]   ;;  %s295_s30 = scalar_lea.hbm %s419_s1, 2048 }
  0x14   :  { %s28_s27 = sshll.u32 %s348_s26, 4  ;;  %p296_p8 = scmp.ne.s32.totalorder %s419_s1, %s295_s30  ;;  %s29_s27 = int_to_ptr.vmem [resolvable:$true] %s28_s27 }
  0x15   :  { %p299_p9 = scmp.lt.u32.totalorder %s295_s30, %s419_s1 }
  0x17   :  { %p301_p10 = pnand %p299_p9, %p296_p8 }
  0x19   :  { %304 = shalt.err (!%p301_p10)
}
  0x1a   :  { %s305_s8 = scalar_lea.vmem %s29_s27, 2048  ;;  %p310_p12 = scmp.lt.s32.totalorder %s29_s27, %s29_s27 }
  0x1b   :  { %p306_p11 = scmp.ne.s32.totalorder %s29_s27, %s305_s8  ;;  %p311_p13 = scmp.lt.s32.totalorder %s305_s8, %s305_s8 }
  0x1d   :  { %p312_p0 = por %p311_p13, %p310_p12 }
  0x1f   :  { %p313_p1 = pnand %p312_p0, %p306_p11 }
  0x21   :  { %316 = shalt.err (!%p313_p1)
}
  0x22   :  { %34 = dma.hbm_to_vmem [thread:$0]  %s419_s1, 2048, %s29_s27, [#allocation7], %s346_s22, %s346_s22, %s347_s23  }
  0x23   :  { %339 = dma.done.wait [#allocation4], 256  }
  0x24   :  { %340 = vsyncadd [#allocation4], 4294967040 }
  0x25   :  { %341 = dma.done.wait [#allocation7], 2048  }
  0x26   :  { %342 = vsyncadd [#allocation7], 4294965248  ;;  %v53_v0 = vld [vmem:[#allocation6] sm:$0xff]  ;;  %v54_v1 = vld [vmem:[#allocation6 + $0x8] sm:$0xff]  ;;  %s349_s11 = smov [#allocation8]  }
  0x27   :  { %v55_v2 = vld [vmem:[#allocation6 + $0x10] sm:$0xff]  ;;  %v236_v3 = vpack.c.bf16 %v54_v1, %v53_v0  ;;  %v56_v4 = vld [vmem:[#allocation6 + $0x18] sm:$0xff]  ;;  %v57_v6 = vld [vmem:[#allocation6 + $0x20] sm:$0xff]  ;;  %s169_s12 = sshll.u32 %s349_s11, 4  ;;  %s170_s12 = int_to_ptr.vmem [resolvable:$true] %s169_s12 }
  0x28   :  { %v240_v5 = vpack.c.bf16 %v56_v4, %v55_v2  ;;  %v58_v7 = vld [vmem:[#allocation6 + $0x28] sm:$0xff]  ;;  %v51_v9 = vld [vmem:[#allocation3] sm:$0xff]  ;;  %v60_v11 = vld [vmem:[#allocation6 + $0x38] sm:$0xff]  ;;  %s317_s13 = scalar_lea.vmem %s170_s12, 256  ;;  %p322_p3 = scmp.lt.s32.totalorder %s170_s12, %s170_s12 }
  0x29   :  { %237 = vmatprep.subr.bf16.mxu0 %v236_v3  ;;  %v244_v8 = vpack.c.bf16 %v58_v7, %v57_v6  ;;  %v59_v10 = vld [vmem:[#allocation6 + $0x30] sm:$0xff]  ;;  %233 = vmatprep.mubr.f32.mxu0 %v51_v9  ;;  %v61_v13 = vld [vmem:[#allocation6 + $0x40] sm:$0xff]  ;;  %v62_v14 = vld [vmem:[#allocation6 + $0x48] sm:$0xff]  ;;  %p318_p2 = scmp.ne.s32.totalorder %s170_s12, %s317_s13  ;;  %p323_p4 = scmp.lt.s32.totalorder %s317_s13, %s317_s13 }
  0x2a   :  { %239 = vmatpush3.bf16.msra.mxu0 %v236_v3  ;;  %v248_v12 = vpack.c.bf16 %v60_v11, %v59_v10  ;;  %v252_v15 = vpack.c.bf16 %v62_v14, %v61_v13  ;;  %v63_v16 = vld [vmem:[#allocation6 + $0x50] sm:$0xff]  ;;  %v64_v17 = vld [vmem:[#allocation6 + $0x58] sm:$0xff]  ;;  %v65_v19 = vld [vmem:[#allocation6 + $0x60] sm:$0xff] }
  0x2b   :  { %241 = vmatprep.subr.bf16.mxu0 %v240_v5  ;;  %v256_v18 = vpack.c.bf16 %v64_v17, %v63_v16  ;;  %v66_v20 = vld [vmem:[#allocation6 + $0x68] sm:$0xff]  ;;  %v67_v22 = vld [vmem:[#allocation6 + $0x70] sm:$0xff]  ;;  %v68_v23 = vld [vmem:[#allocation6 + $0x78] sm:$0xff]  ;;  %p324_p5 = por %p323_p4, %p322_p3 }
  0x2c   :  { %v260_v21 = vpack.c.bf16 %v66_v20, %v65_v19  ;;  %v264_v24 = vpack.c.bf16 %v68_v23, %v67_v22  ;;  %v52_v25 = vld [vmem:[#allocation3 + $0x8] sm:$0xff]  ;;  %v182_v26 = vld [vmem:[%s420_s2] ss:$0 sm:$0xff] }
  0x2d   :  { %p325_p6 = pnand %p324_p5, %p318_p2 }
  0x2e   :  { %243 = vmatpush3.bf16.msra.mxu0 %v240_v5 }
  0x2f   :  { %245 = vmatprep.subr.bf16.mxu0 %v244_v8 }
  0x32   :  { %247 = vmatpush3.bf16.msra.mxu0 %v244_v8 }
  0x33   :  { %249 = vmatprep.subr.bf16.mxu0 %v248_v12 }
  0x36   :  { %251 = vmatpush3.bf16.msra.mxu0 %v248_v12 }
  0x37   :  { %253 = vmatprep.subr.bf16.mxu0 %v252_v15 }
  0x3a   :  { %255 = vmatpush3.bf16.msra.mxu0 %v252_v15 }
  0x3b   :  { %257 = vmatprep.subr.bf16.mxu0 %v256_v18 }
  0x3e   :  { %259 = vmatpush3.bf16.msra.mxu0 %v256_v18 }
  0x3f   :  { %261 = vmatprep.subr.bf16.mxu0 %v260_v21 }
  0x42   :  { %263 = vmatpush3.bf16.msra.mxu0 %v260_v21 }
  0x43   :  { %265 = vmatprep.subr.bf16.mxu0 %v264_v24 }
  0x46   :  { %267 = vmatpush3.bf16.msra.mxu0 %v264_v24 }
  0x49   :  { %234 = vmatmul.mubr.f32.vlgmr.msra.gmra.mrb[0].mxu0 %v52_v25 }
 0x11c   :  { %v235_v27 = vpop.f32.mrb[0].mxu0 }
 0x11d   :  { %v161_v28 = vadd.f32 %v235_v27, %v182_v26  ;;  %v135_v29 = vpop.f32.mrb[1].mxu0 }
 0x11e   :  { %v160_v30 = vadd.f32 %v182_v26, %v135_v29 }
 0x11f   :  { %163 = vst [vmem:[#allocation8 + $0x8] sm:$0xff] %v161_v28 }
 0x120   :  { %162 = vst [vmem:[#allocation8] sm:$0xff] %v160_v30 }
 0x121   :  { %328 = shalt.err (!%p325_p6)
}
 0x122   :  { %s329_s2 = scalar_lea.hbm %s421_s3, 256 }
 0x123   :  { %p330_p7 = scmp.ne.s32.totalorder %s421_s3, %s329_s2  ;;  %p333_p8 = scmp.lt.u32.totalorder %s329_s2, %s421_s3 }
 0x125   :  { %p335_p9 = pnand %p333_p8, %p330_p7 }
 0x127   :  { %338 = shalt.err (!%p335_p9)
}
 0x128   :  { %175 = dma.vmem_to_hbm [thread:$0]  %s170_s12, 256, %s421_s3, [#allocation5], %s346_s22, %s346_s22, %s347_s23  }
 0x129   :  { %343 = dma.done.wait [#allocation5], 256  }
 0x12a   :  { %344 = vsyncadd [#allocation5], 4294967040 }
 0x12b   :  { %179 = vsyncpa [#allocation4], 1 }
 0x12c   :  { %180 = vsyncpa [#allocation7], 1 }
 0x12d   :  { %181 = vsyncpa [#allocation5], 1 }

</bundles_post_ra>
